<compile_context>
chip_gen: v7x
topology: tpu7x:2x2x1
jax: 0.10.0
libtpu: 0.0.40
codegen_flags: <defaults>
</compile_context>

<pallas_src>
import functools
import math

import jax
import jax.numpy as jnp
import numpy as np
from jax.experimental import pallas as pl
from jax.experimental.pallas import tpu as pltpu

# ----- synthetic "config" --------------------------------------------------
BATCH = 2          # batch size
SEQ = 8            # sequence length
DIM = 32           # llama hidden dim
NUM_HEADS = 4
HEAD_DIM = DIM // NUM_HEADS
FFN = 64           # SwiGLU intermediate dim
VOCAB = 64
NUM_LABELS = 5
DROPOUT_P = 0.1    # config.hidden_dropout_prob (identity in eval mode)
EPS = 1e-5


# ---------------------------------------------------------------------------
# Single fused kernel: embedding gather + Llama-style layer + final RMSNorm
# (on pooled rows only) + dropout + classifier head.
# ---------------------------------------------------------------------------
def fused_llama_classifier_kernel(
        seed_ref, ids_ref, emb_ref, wqkv_ref, wo_ref, wgu_ref, wd_ref,
        g1_ref, g2_ref, gf_ref, wh_ref, bh_ref, amask_ref, kvmask_ref,
        out_ref, *, batch, seq, num_heads, head_dim, ffn, eps, dropout_p,
        training):
    f32, bf16 = jnp.float32, jnp.bfloat16
    bt = batch * seq
    dim = num_heads * head_dim

    # ---- embedding gather fused as one-hot @ table (uses idle MXU; removes the
    #      wrapper-side XLA gather). VOCAB is tiny so the one-hot is one vreg row.
    vocab = emb_ref.shape[0]
    col = jax.lax.broadcasted_iota(jnp.int32, (bt, vocab), 1)
    onehot = (col == ids_ref[...]).astype(f32)                    # (bt, vocab)
    x = jnp.dot(onehot, emb_ref[...], preferred_element_type=f32)  # (bt, dim) f32

    def rmsnorm(v, g):
        ms = jnp.mean(v * v, axis=-1, keepdims=True)
        return v * jax.lax.rsqrt(ms + eps) * g

    # ---- attention block ----
    h1 = rmsnorm(x, g1_ref[...])
    # ONE fused QKV matmul; Q columns are pre-scaled by 1/sqrt(head_dim).
    qkv = jnp.dot(h1.astype(bf16), wqkv_ref[...],
                  preferred_element_type=f32)                     # (bt, 3*dim)
    q = qkv[:, 0:dim]
    k = qkv[:, dim:2 * dim]
    v = qkv[:, 2 * dim:3 * dim]

    # kvmask[(h, j), (h', d)] = 1 iff h == h'  -> block-diagonal head expansion.
    kvmask = kvmask_ref[...]                                      # (H*bt, dim) f32
    k_exp = (jnp.concatenate([k] * num_heads, axis=0) * kvmask).astype(bf16)
    v_exp = (jnp.concatenate([v] * num_heads, axis=0) * kvmask).astype(bf16)

    # Per-head scores for ALL heads/batches in one matmul: s[r, h*bt+j].
    s = jax.lax.dot_general(q.astype(bf16), k_exp,
                            (((1,), (1,)), ((), ())),
                            preferred_element_type=f32)           # (bt, H*bt)
    s = s + amask_ref[...]          # precomputed additive causal/batch mask
    # Single softmax: the global row max is a valid shift for every head block
    # (softmax is shift-invariant); per-head denominators come from the mask.
    p = jnp.exp(s - jnp.max(s, axis=-1, keepdims=True))           # f32
    p_bf = p.astype(bf16)
    o_un = jnp.dot(p_bf, v_exp, preferred_element_type=f32)       # (bt, dim)
    l_exp = jnp.dot(p_bf, kvmask.astype(bf16),
                    preferred_element_type=f32)                   # per-head denom
    attn = o_un * pl.reciprocal(l_exp, approx=True)               # EUP slot
    # Heads already on the lane axis -> single output projection.
    x2 = x + jnp.dot(attn.astype(bf16), wo_ref[...],
                     preferred_element_type=f32)

    # ---- SwiGLU MLP block (gate|up fused into one lane-dense matmul) ----
    h2 = rmsnorm(x2, g2_ref[...])
    gu = jnp.dot(h2.astype(bf16), wgu_ref[...],
                 preferred_element_type=f32)                      # (bt, 2*ffn)
    gm = gu[:, 0:ffn]
    um = gu[:, ffn:2 * ffn]
    act = gm * jax.nn.sigmoid(gm) * um                            # f32 (v5e-safe)
    x3 = x2 + jnp.dot(act.astype(bf16), wd_ref[...],
                      preferred_element_type=f32)

    # ---- last-token pooling via static row slices; final RMSNorm on B rows ----
    pooled = jnp.concatenate(
        [x3[b * seq + seq - 1: b * seq + seq, :] for b in range(batch)], axis=0)
    pooled = rmsnorm(pooled, gf_ref[...])                         # (batch, dim)

    # ---- dropout (identity in eval mode) + classifier head ----
    if training and dropout_p > 0.0:
        pltpu.prng_seed(seed_ref[0])
        bits = pltpu.prng_random_bits(pooled.shape)
        u = (pltpu.bitcast(bits, jnp.uint32) >> 8).astype(f32) * (1.0 / (1 << 24))
        pooled = pooled * (u >= dropout_p).astype(f32) * (1.0 / (1.0 - dropout_p))

    logits = jnp.dot(pooled.astype(bf16), wh_ref[...],
                     preferred_element_type=f32) + bh_ref[...]
    out_ref[...] = logits                                         # (batch, labels)


# ---------------------------------------------------------------------------
# One-time parameter packing (fused/bf16 weights + constant masks).  This is
# the hoisted "wrapper glue" -> call it ONCE, not per forward pass.
# ---------------------------------------------------------------------------
def pack_kernel_params(params):
    hd = HEAD_DIM
    bt = BATCH * SEQ
    wqkv = jnp.concatenate(
        [params["wq"] * (1.0 / math.sqrt(hd)), params["wk"], params["wv"]],
        axis=1)                                                   # (D, 3D)
    wgu = jnp.concatenate([params["wg"], params["wu"]], axis=1)   # (D, 2*FFN)

    # Additive causal + same-batch mask, tiled across head column blocks.
    r = np.arange(bt)[:, None]
    j = np.arange(bt)[None, :]
    ok = (r // SEQ == j // SEQ) & (r >= j)
    amask = np.where(np.tile(ok, (1, NUM_HEADS)), 0.0, -1e30).astype(np.float32)

    # Head block mask: kvmask[h*bt + j, h'*hd + d] = (h == h').
    row_h = (np.arange(NUM_HEADS * bt) // bt)[:, None]
    col_h = (np.arange(DIM) // hd)[None, :]
    kvmask = (row_h == col_h).astype(np.float32)

    return {
        "emb": params["emb"].astype(jnp.float32),
        "wqkv": wqkv.astype(jnp.bfloat16),
        "wo": params["wo"].astype(jnp.bfloat16),
        "wgu": wgu.astype(jnp.bfloat16),
        "wd": params["wd"].astype(jnp.bfloat16),
        "g1": params["g1"], "g2": params["g2"], "gf": params["gf"],
        "wh_t": params["w_head"].T.astype(jnp.bfloat16),          # (D, L)
        "bh": params["b_head"].reshape(1, -1).astype(jnp.float32),
        "amask": jnp.asarray(amask),
        "kvmask": jnp.asarray(kvmask),
    }


# ---------------------------------------------------------------------------
# Per-call wrapper: only reshapes input_ids and launches the single pallas_call.
# ---------------------------------------------------------------------------
def llama_sent_classifier(input_ids, packed, *, training=False, seed=0):
    B, T = input_ids.shape
    ids2d = input_ids.reshape(B * T, 1).astype(jnp.int32)
    seed_arr = jnp.array([seed], dtype=jnp.int32)

    vmem = lambda: pl.BlockSpec(memory_space=pltpu.MemorySpace.VMEM)
    kernel = functools.partial(
        fused_llama_classifier_kernel, batch=B, seq=T, num_heads=NUM_HEADS,
        head_dim=HEAD_DIM, ffn=FFN, eps=EPS, dropout_p=DROPOUT_P,
        training=training)

    return pl.pallas_call(
        kernel,
        out_shape=jax.ShapeDtypeStruct((B, NUM_LABELS), jnp.float32),
        in_specs=[pl.BlockSpec(memory_space=pltpu.MemorySpace.SMEM)]  # seed
                 + [vmem() for _ in range(13)],
        out_specs=vmem(),
    )(seed_arr, ids2d, packed["emb"], packed["wqkv"], packed["wo"],
      packed["wgu"], packed["wd"], packed["g1"], packed["g2"], packed["gf"],
      packed["wh_t"], packed["bh"], packed["amask"], packed["kvmask"])


# ---------------------------------------------------------------------------
# Pure-JAX f32 reference for correctness checking.
# ---------------------------------------------------------------------------
def reference(input_ids, params):
    x = params["emb"][input_ids].astype(jnp.float32)
    rms = lambda v, g: v * jax.lax.rsqrt(jnp.mean(v * v, -1, keepdims=True)
                                         + EPS) * g
    h = rms(x, params["g1"])
    q, k, v = h @ params["wq"], h @ params["wk"], h @ params["wv"]
    B, T, D = x.shape
    qh = q.reshape(B, T, NUM_HEADS, HEAD_DIM)
    kh = k.reshape(B, T, NUM_HEADS, HEAD_DIM)
    vh = v.reshape(B, T, NUM_HEADS, HEAD_DIM)
    s = jnp.einsum("bqhd,bkhd->bhqk", qh, kh) / math.sqrt(HEAD_DIM)
    mask = jnp.tril(jnp.ones((T, T), bool))
    s = jnp.where(mask, s, -1e30)
    p = jax.nn.softmax(s, axis=-1)
    o = jnp.einsum("bhqk,bkhd->bqhd", p, vh).reshape(B, T, D)
    x2 = x + o @ params["wo"]
    h2 = rms(x2, params["g2"])
    g, u = h2 @ params["wg"], h2 @ params["wu"]
    x3 = x2 + (g * jax.nn.sigmoid(g) * u) @ params["wd"]
    hid = rms(x3, params["gf"])
    pooled = hid[:, -1, :]                          # eval-mode dropout = identity
    return pooled @ params["w_head"].T + params["b_head"]


def make_params(key):
    ks = jax.random.split(key, 12)
    n = lambda k, shape, s: (jax.random.normal(k, shape, jnp.float32) * s)
    return {
        "emb": n(ks[0], (VOCAB, DIM), 0.1),
        "wq": n(ks[1], (DIM, DIM), 0.05),
        "wk": n(ks[2], (DIM, DIM), 0.05),
        "wv": n(ks[3], (DIM, DIM), 0.05),
        "wo": n(ks[4], (DIM, DIM), 0.05),
        "wg": n(ks[5], (DIM, FFN), 0.05),
        "wu": n(ks[6], (DIM, FFN), 0.05),
        "wd": n(ks[7], (FFN, DIM), 0.05),
        "g1": jnp.ones((1, DIM), jnp.float32),
        "g2": jnp.ones((1, DIM), jnp.float32),
        "gf": jnp.ones((1, DIM), jnp.float32),
        "w_head": n(ks[8], (NUM_LABELS, DIM), 0.05),   # torch.nn.Linear weight (L, D)
        "b_head": n(ks[9], (NUM_LABELS,), 0.01),
    }


if __name__ == "__main__":
    key = jax.random.PRNGKey(0)
    pkey, dkey = jax.random.split(key)
    params = make_params(pkey)
    packed = pack_kernel_params(params)   # one-time weight packing (hoisted glue)
    input_ids = jax.random.randint(dkey, (BATCH, SEQ), 0, VOCAB, dtype=jnp.int32)

    logits = llama_sent_classifier(input_ids, packed, training=False)
    logits = jax.block_until_ready(logits)

    ref = reference(input_ids, params)
    # bf16 MXU operands + approx reciprocal give ~1e-3..1e-2 deviation vs. the
    # pure-f32 reference; tolerance widened accordingly (deliberate, documented).
    np.testing.assert_allclose(np.asarray(logits), np.asarray(ref),
                               rtol=2e-2, atol=2e-2)
    assert logits.shape == (BATCH, NUM_LABELS)
    print("KERNEL_OK")
</pallas_src>

<mosaic_0001>
module attributes {stable_mosaic.version = 11 : i64} {
  func.func @fused_llama_classifier_kernel(%arg0: memref<1xi32, #tpu.memory_space<smem>>, %arg1: memref<16x1xi32, #tpu.memory_space<vmem>>, %arg2: memref<64x32xf32, #tpu.memory_space<vmem>>, %arg3: memref<32x96xbf16, #tpu.memory_space<vmem>>, %arg4: memref<32x32xbf16, #tpu.memory_space<vmem>>, %arg5: memref<32x128xbf16, #tpu.memory_space<vmem>>, %arg6: memref<64x32xbf16, #tpu.memory_space<vmem>>, %arg7: memref<1x32xf32, #tpu.memory_space<vmem>>, %arg8: memref<1x32xf32, #tpu.memory_space<vmem>>, %arg9: memref<1x32xf32, #tpu.memory_space<vmem>>, %arg10: memref<32x5xbf16, #tpu.memory_space<vmem>>, %arg11: memref<1x5xf32, #tpu.memory_space<vmem>>, %arg12: memref<16x64xf32, #tpu.memory_space<vmem>>, %arg13: memref<64x32xf32, #tpu.memory_space<vmem>>, %arg14: memref<2x5xf32, #tpu.memory_space<vmem>>) attributes {dimension_semantics = [], scalar_prefetch = 0 : i64, scratch_operands = 0 : i64, tpu.core_type = #tpu.core_type<tc>} {
    %0 = tpu.iota {dimensions = array<i32: 1>} : vector<16x64xi32>
    %c0 = arith.constant 0 : index
    %c0_0 = arith.constant 0 : index
    %1 = vector.load %arg1[%c0, %c0_0] : memref<16x1xi32, #tpu.memory_space<vmem>>, vector<16x1xi32>
    %2 = vector.broadcast %1 : vector<16x1xi32> to vector<16x64xi32>
    %3 = arith.cmpi eq, %0, %2 : vector<16x64xi32>
    %4 = arith.extui %3 : vector<16x64xi1> to vector<16x64xi32>
    %5 = arith.sitofp %4 : vector<16x64xi32> to vector<16x64xf32>
    %c0_1 = arith.constant 0 : index
    %c0_2 = arith.constant 0 : index
    %6 = vector.load %arg2[%c0_1, %c0_2] : memref<64x32xf32, #tpu.memory_space<vmem>>, vector<64x32xf32>
    %cst = arith.constant dense<0.000000e+00> : vector<16x32xf32>
    %7 = tpu.matmul %5, %6, %cst {dimension_numbers = #tpu.dot_dimension_numbers<[1], [0], [0], [1], [0, 0, 1, 1], [], []>} : vector<16x64xf32>, vector<64x32xf32>, vector<16x32xf32> -> vector<16x32xf32>
    %c0_3 = arith.constant 0 : index
    %c0_4 = arith.constant 0 : index
    %8 = vector.load %arg7[%c0_3, %c0_4] : memref<1x32xf32, #tpu.memory_space<vmem>>, vector<1x32xf32>
    %9 = arith.mulf %7, %7 : vector<16x32xf32>
    %cst_5 = arith.constant dense<0.000000e+00> : vector<16xf32>
    %10 = vector.multi_reduction <add>, %9, %cst_5 [1] : vector<16x32xf32> to vector<16xf32>
    %11 = vector.shape_cast %10 : vector<16xf32> to vector<16x1xf32>
    %cst_6 = arith.constant 3.200000e+01 : f32
    %12 = vector.broadcast %cst_6 : f32 to vector<16x1xf32>
    %13 = arith.divf %11, %12 : vector<16x1xf32>
    %cst_7 = arith.constant 9.99999974E-6 : f32
    %14 = vector.broadcast %cst_7 : f32 to vector<16x1xf32>
    %15 = arith.addf %13, %14 : vector<16x1xf32>
    %16 = math.rsqrt %15 : vector<16x1xf32>
    %17 = vector.broadcast %16 : vector<16x1xf32> to vector<16x32xf32>
    %18 = arith.mulf %7, %17 : vector<16x32xf32>
    %19 = vector.broadcast %8 : vector<1x32xf32> to vector<16x32xf32>
    %20 = arith.mulf %18, %19 : vector<16x32xf32>
    %21 = arith.truncf %20 : vector<16x32xf32> to vector<16x32xbf16>
    %c0_8 = arith.constant 0 : index
    %c0_9 = arith.constant 0 : index
    %22 = vector.load %arg3[%c0_8, %c0_9] : memref<32x96xbf16, #tpu.memory_space<vmem>>, vector<32x96xbf16>
    %cst_10 = arith.constant dense<0.000000e+00> : vector<16x96xf32>
    %23 = tpu.matmul %21, %22, %cst_10 {dimension_numbers = #tpu.dot_dimension_numbers<[1], [0], [0], [1], [0, 0, 1, 1], [], []>} : vector<16x32xbf16>, vector<32x96xbf16>, vector<16x96xf32> -> vector<16x96xf32>
    %24 = vector.extract_strided_slice %23 {offsets = [0, 0], sizes = [16, 32], strides = [1, 1]} : vector<16x96xf32> to vector<16x32xf32>
    %25 = vector.extract_strided_slice %23 {offsets = [0, 32], sizes = [16, 32], strides = [1, 1]} : vector<16x96xf32> to vector<16x32xf32>
    %26 = vector.extract_strided_slice %23 {offsets = [0, 64], sizes = [16, 32], strides = [1, 1]} : vector<16x96xf32> to vector<16x32xf32>
    %c0_11 = arith.constant 0 : index
    %c0_12 = arith.constant 0 : index
    %27 = vector.load %arg13[%c0_11, %c0_12] : memref<64x32xf32, #tpu.memory_space<vmem>>, vector<64x32xf32>
    %28 = tpu.concatenate %25, %25, %25, %25 in 0 : vector<16x32xf32>, vector<16x32xf32>, vector<16x32xf32>, vector<16x32xf32> -> vector<64x32xf32>
    %29 = arith.mulf %28, %27 : vector<64x32xf32>
    %30 = arith.truncf %29 : vector<64x32xf32> to vector<64x32xbf16>
    %31 = tpu.concatenate %26, %26, %26, %26 in 0 : vector<16x32xf32>, vector<16x32xf32>, vector<16x32xf32>, vector<16x32xf32> -> vector<64x32xf32>
    %32 = arith.mulf %31, %27 : vector<64x32xf32>
    %33 = arith.truncf %32 : vector<64x32xf32> to vector<64x32xbf16>
    %34 = arith.truncf %24 : vector<16x32xf32> to vector<16x32xbf16>
    %cst_13 = arith.constant dense<0.000000e+00> : vector<16x64xf32>
    %35 = tpu.matmul %34, %30, %cst_13 {dimension_numbers = #tpu.dot_dimension_numbers<[1], [1], [0], [0], [0, 0, 1, 0], [], []>} : vector<16x32xbf16>, vector<64x32xbf16>, vector<16x64xf32> -> vector<16x64xf32>
    %c0_14 = arith.constant 0 : index
    %c0_15 = arith.constant 0 : index
    %36 = vector.load %arg12[%c0_14, %c0_15] : memref<16x64xf32, #tpu.memory_space<vmem>>, vector<16x64xf32>
    %37 = arith.addf %35, %36 : vector<16x64xf32>
    %cst_16 = arith.constant dense<0xFF800000> : vector<16xf32>
    %38 = vector.multi_reduction <maximumf>, %37, %cst_16 [1] : vector<16x64xf32> to vector<16xf32>
    %39 = vector.shape_cast %38 : vector<16xf32> to vector<16x1xf32>
    %40 = vector.broadcast %39 : vector<16x1xf32> to vector<16x64xf32>
    %41 = arith.subf %37, %40 : vector<16x64xf32>
    %42 = math.exp %41 : vector<16x64xf32>
    %43 = arith.truncf %42 : vector<16x64xf32> to vector<16x64xbf16>
    %cst_17 = arith.constant dense<0.000000e+00> : vector<16x32xf32>
    %44 = tpu.matmul %43, %33, %cst_17 {dimension_numbers = #tpu.dot_dimension_numbers<[1], [0], [0], [1], [0, 0, 1, 1], [], []>} : vector<16x64xbf16>, vector<64x32xbf16>, vector<16x32xf32> -> vector<16x32xf32>
    %45 = arith.truncf %27 : vector<64x32xf32> to vector<64x32xbf16>
    %cst_18 = arith.constant dense<0.000000e+00> : vector<16x32xf32>
    %46 = tpu.matmul %43, %45, %cst_18 {dimension_numbers = #tpu.dot_dimension_numbers<[1], [0], [0], [1], [0, 0, 1, 1], [], []>} : vector<16x64xbf16>, vector<64x32xbf16>, vector<16x32xf32> -> vector<16x32xf32>
    %47 = tpu.reciprocal %46 {approx = true} : vector<16x32xf32> -> vector<16x32xf32>
    %48 = arith.mulf %44, %47 : vector<16x32xf32>
    %49 = arith.truncf %48 : vector<16x32xf32> to vector<16x32xbf16>
    %c0_19 = arith.constant 0 : index
    %c0_20 = arith.constant 0 : index
    %50 = vector.load %arg4[%c0_19, %c0_20] : memref<32x32xbf16, #tpu.memory_space<vmem>>, vector<32x32xbf16>
    %cst_21 = arith.constant dense<0.000000e+00> : vector<16x32xf32>
    %51 = tpu.matmul %49, %50, %cst_21 {dimension_numbers = #tpu.dot_dimension_numbers<[1], [0], [0], [1], [0, 0, 1, 1], [], []>} : vector<16x32xbf16>, vector<32x32xbf16>, vector<16x32xf32> -> vector<16x32xf32>
    %52 = arith.addf %7, %51 : vector<16x32xf32>
    %c0_22 = arith.constant 0 : index
    %c0_23 = arith.constant 0 : index
    %53 = vector.load %arg8[%c0_22, %c0_23] : memref<1x32xf32, #tpu.memory_space<vmem>>, vector<1x32xf32>
    %54 = arith.mulf %52, %52 : vector<16x32xf32>
    %cst_24 = arith.constant dense<0.000000e+00> : vector<16xf32>
    %55 = vector.multi_reduction <add>, %54, %cst_24 [1] : vector<16x32xf32> to vector<16xf32>
    %56 = vector.shape_cast %55 : vector<16xf32> to vector<16x1xf32>
    %cst_25 = arith.constant 3.200000e+01 : f32
    %57 = vector.broadcast %cst_25 : f32 to vector<16x1xf32>
    %58 = arith.divf %56, %57 : vector<16x1xf32>
    %cst_26 = arith.constant 9.99999974E-6 : f32
    %59 = vector.broadcast %cst_26 : f32 to vector<16x1xf32>
    %60 = arith.addf %58, %59 : vector<16x1xf32>
    %61 = math.rsqrt %60 : vector<16x1xf32>
    %62 = vector.broadcast %61 : vector<16x1xf32> to vector<16x32xf32>
    %63 = arith.mulf %52, %62 : vector<16x32xf32>
    %64 = vector.broadcast %53 : vector<1x32xf32> to vector<16x32xf32>
    %65 = arith.mulf %63, %64 : vector<16x32xf32>
    %66 = arith.truncf %65 : vector<16x32xf32> to vector<16x32xbf16>
    %c0_27 = arith.constant 0 : index
    %c0_28 = arith.constant 0 : index
    %67 = vector.load %arg5[%c0_27, %c0_28] : memref<32x128xbf16, #tpu.memory_space<vmem>>, vector<32x128xbf16>
    %cst_29 = arith.constant dense<0.000000e+00> : vector<16x128xf32>
    %68 = tpu.matmul %66, %67, %cst_29 {dimension_numbers = #tpu.dot_dimension_numbers<[1], [0], [0], [1], [0, 0, 1, 1], [], []>} : vector<16x32xbf16>, vector<32x128xbf16>, vector<16x128xf32> -> vector<16x128xf32>
    %69 = vector.extract_strided_slice %68 {offsets = [0, 0], sizes = [16, 64], strides = [1, 1]} : vector<16x128xf32> to vector<16x64xf32>
    %70 = vector.extract_strided_slice %68 {offsets = [0, 64], sizes = [16, 64], strides = [1, 1]} : vector<16x128xf32> to vector<16x64xf32>
    %71 = arith.negf %69 : vector<16x64xf32>
    %72 = math.exp %71 : vector<16x64xf32>
    %cst_30 = arith.constant 1.000000e+00 : f32
    %73 = vector.broadcast %cst_30 : f32 to vector<16x64xf32>
    %74 = arith.addf %73, %72 : vector<16x64xf32>
    %75 = arith.divf %73, %74 : vector<16x64xf32>
    %76 = arith.mulf %69, %75 : vector<16x64xf32>
    %77 = arith.mulf %76, %70 : vector<16x64xf32>
    %78 = arith.truncf %77 : vector<16x64xf32> to vector<16x64xbf16>
    %c0_31 = arith.constant 0 : index
    %c0_32 = arith.constant 0 : index
    %79 = vector.load %arg6[%c0_31, %c0_32] : memref<64x32xbf16, #tpu.memory_space<vmem>>, vector<64x32xbf16>
    %cst_33 = arith.constant dense<0.000000e+00> : vector<16x32xf32>
    %80 = tpu.matmul %78, %79, %cst_33 {dimension_numbers = #tpu.dot_dimension_numbers<[1], [0], [0], [1], [0, 0, 1, 1], [], []>} : vector<16x64xbf16>, vector<64x32xbf16>, vector<16x32xf32> -> vector<16x32xf32>
    %81 = arith.addf %52, %80 : vector<16x32xf32>
    %82 = vector.extract_strided_slice %81 {offsets = [7, 0], sizes = [1, 32], strides = [1, 1]} : vector<16x32xf32> to vector<1x32xf32>
    %83 = vector.extract_strided_slice %81 {offsets = [15, 0], sizes = [1, 32], strides = [1, 1]} : vector<16x32xf32> to vector<1x32xf32>
    %84 = tpu.concatenate %82, %83 in 0 : vector<1x32xf32>, vector<1x32xf32> -> vector<2x32xf32>
    %c0_34 = arith.constant 0 : index
    %c0_35 = arith.constant 0 : index
    %85 = vector.load %arg9[%c0_34, %c0_35] : memref<1x32xf32, #tpu.memory_space<vmem>>, vector<1x32xf32>
    %86 = arith.mulf %84, %84 : vector<2x32xf32>
    %cst_36 = arith.constant dense<0.000000e+00> : vector<2xf32>
    %87 = vector.multi_reduction <add>, %86, %cst_36 [1] : vector<2x32xf32> to vector<2xf32>
    %88 = vector.shape_cast %87 : vector<2xf32> to vector<2x1xf32>
    %cst_37 = arith.constant 3.200000e+01 : f32
    %89 = vector.broadcast %cst_37 : f32 to vector<2x1xf32>
    %90 = arith.divf %88, %89 : vector<2x1xf32>
    %cst_38 = arith.constant 9.99999974E-6 : f32
    %91 = vector.broadcast %cst_38 : f32 to vector<2x1xf32>
    %92 = arith.addf %90, %91 : vector<2x1xf32>
    %93 = math.rsqrt %92 : vector<2x1xf32>
    %94 = vector.broadcast %93 : vector<2x1xf32> to vector<2x32xf32>
    %95 = arith.mulf %84, %94 : vector<2x32xf32>
    %96 = vector.broadcast %85 : vector<1x32xf32> to vector<2x32xf32>
    %97 = arith.mulf %95, %96 : vector<2x32xf32>
    %98 = arith.truncf %97 : vector<2x32xf32> to vector<2x32xbf16>
    %c0_39 = arith.constant 0 : index
    %c0_40 = arith.constant 0 : index
    %99 = vector.load %arg10[%c0_39, %c0_40] : memref<32x5xbf16, #tpu.memory_space<vmem>>, vector<32x5xbf16>
    %cst_41 = arith.constant dense<0.000000e+00> : vector<2x5xf32>
    %100 = tpu.matmul %98, %99, %cst_41 {dimension_numbers = #tpu.dot_dimension_numbers<[1], [0], [0], [1], [0, 0, 1, 1], [], []>} : vector<2x32xbf16>, vector<32x5xbf16>, vector<2x5xf32> -> vector<2x5xf32>
    %c0_42 = arith.constant 0 : index
    %c0_43 = arith.constant 0 : index
    %101 = vector.load %arg11[%c0_42, %c0_43] : memref<1x5xf32, #tpu.memory_space<vmem>>, vector<1x5xf32>
    %102 = vector.broadcast %101 : vector<1x5xf32> to vector<2x5xf32>
    %103 = arith.addf %100, %102 : vector<2x5xf32>
    %c0_44 = arith.constant 0 : index
    %c0_45 = arith.constant 0 : index
    %104 = vector.load %arg14[%c0_44, %c0_45] : memref<2x5xf32, #tpu.memory_space<vmem>>, vector<2x5xf32>
    tpu.vector_store %arg14[%c0_44, %c0_45], %103 {strides = array<i32>} : memref<2x5xf32, #tpu.memory_space<vmem>>, vector<2x5xf32>,
    return
  }
}

</mosaic_0001>

<bundles_post_ra>
// kernel: tpu_custom_call.1
= control target key start
LH: loop header
LB: loop body
LE: loop exit
PB: predicated region body
PF: predicated region fallthrough
CT: control target
= control target key end

     0   :  { %v1142_v2 = vmov 0   ;;  %v1143_v11 = vmov 0.0   ;;  %s1506_s0 = inlined_call_operand.<no memory space> [shape: s32[1], index: 0, kind: input, shape index: {}]   ;;  %s1507_s1 = inlined_call_operand.vmem [shape: s32[16,1], index: 1, kind: input, shape index: {}]   ;;  %s1508_s2 = inlined_call_operand.vmem [shape: f32[64,32], index: 2, kind: input, shape index: {}]   ;;  %s1509_s3 = inlined_call_operand.vmem [shape: bf16[32,96], index: 3, kind: input, shape index: {}]   ;;  %s1510_s4 = inlined_call_operand.vmem [shape: bf16[32,32], index: 4, kind: input, shape index: {}]   ;;  %s1511_s5 = inlined_call_operand.vmem [shape: bf16[32,128], index: 5, kind: input, shape index: {}]   ;;  %s1512_s6 = inlined_call_operand.vmem [shape: bf16[64,32], index: 6, kind: input, shape index: {}]   ;;  %s1513_s7 = inlined_call_operand.vmem [shape: f32[1,32], index: 7, kind: input, shape index: {}]   ;;  %s1514_s8 = inlined_call_operand.vmem [shape: f32[1,32], index: 8, kind: input, shape index: {}]   ;;  %s1515_s9 = inlined_call_operand.vmem [shape: f32[1,32], index: 9, kind: input, shape index: {}]   ;;  %s1516_s10 = inlined_call_operand.vmem [shape: bf16[32,5], index: 10, kind: input, shape index: {}]   ;;  %s1517_s11 = inlined_call_operand.vmem [shape: f32[1,5], index: 11, kind: input, shape index: {}]   ;;  %s1518_s12 = inlined_call_operand.vmem [shape: f32[16,64], index: 12, kind: input, shape index: {}]   ;;  %s1519_s13 = inlined_call_operand.vmem [shape: f32[64,32], index: 13, kind: input, shape index: {}]   ;;  %s1520_s14 = inlined_call_operand.hbm [shape: f32[2,5], index: 14, kind: output, shape index: {}]  }
   0x1   :  { %v52_v0 = vld [vmem:[%s1507_s1] sm:$0xff]  ;;  %1079 = vset.pattern.permute.xlu0 %v1142_v2  ;;  %v67_v3 = vld [vmem:[%s1508_s2 + $0x8] sm:$0xff]  ;;  %v68_v4 = vld [vmem:[%s1508_s2 + $0x10] sm:$0xff]  ;;  %976 = vmatprep.subr.bf16.mxu1 %v1143_v11 }
   0x2   :  { %v66_v1 = vld [vmem:[%s1508_s2] sm:$0xff]  ;;  %v69_v5 = vld [vmem:[%s1508_s2 + $0x18] sm:$0xff]  ;;  %55 = vperm.xlu0 %1079, %v52_v0   ;;  %v53_v6 = vld [vmem:[%s1507_s1 + $0x8] sm:$0xff] }
   0x3   :  { %v1056_v7 = vpack.c.bf16 %v67_v3, %v66_v1  ;;  %v1060_v8 = vpack.c.bf16 %v69_v5, %v68_v4  ;;  %v70_v9 = vld [vmem:[%s1508_s2 + $0x20] sm:$0xff]  ;;  %v71_v10 = vld [vmem:[%s1508_s2 + $0x28] sm:$0xff]  ;;  %v72_v12 = vld [vmem:[%s1508_s2 + $0x30] sm:$0xff] }
   0x4   :  { %v73_v13 = vld [vmem:[%s1508_s2 + $0x38] sm:$0xff]  ;;  %v1064_v14 = vpack.c.bf16 %v71_v10, %v70_v9 }
   0x5   :  { %1057 = vmatprep.subr.bf16.mxu0 %v1056_v7  ;;  %v1068_v15 = vpack.c.bf16 %v73_v13, %v72_v12 }
   0x6   :  { %1059 = vmatpush3.bf16.msra.mxu0 %v1056_v7  ;;  %58 = vperm.xlu0 %1079, %v53_v6  }
   0x7   :  { %1061 = vmatprep.subr.bf16.mxu0 %v1060_v8 }
   0xa   :  { %1063 = vmatpush3.bf16.msra.mxu0 %v1060_v8 }
   0xb   :  { %1065 = vmatprep.subr.bf16.mxu0 %v1064_v14 }
   0xc   :  { %20 = vsyncpa [#allocation4], 0  ;;  %v50_v16 = vlaneseq  ;;  %vm74_vm0 = vcmask 523264   ;;  %vm159_vm3 = vcmask 261120   ;;  %v1080_v28 = vld [vmem:[%s1509_s3] sm:$0xff]   ;;  %vm1144_vm4 = vmmov 0  }
   0xd   :  { %980 = vmatprep.mubr.msk.bf16.mxu1 %vm1144_vm4, %v1143_v11  ;;  %977 = vmatpush3.bf16.msra.mxu1 %v1080_v28  ;;  %v1081_v29 = vld [vmem:[%s1509_s3 + $0x8] sm:$0xff]   ;;  %v1285_v30 = vld [vmem:[%s1519_s13] sm:$0xff]  ;;  %s1145_s18 = smov 32   ;;  %v1296_v32 = vld [vmem:[%s1519_s13 + $0x10] sm:$0xff]  ;;  %vm783_vm5 = vcmask 1040384   ;;  %vm787_vm6 = vcmask 254976  }
   0xe   :  { %1067 = vmatpush3.bf16.msra.mxu0 %v1064_v14  ;;  %v51_v17 = vand.u32 127, %v50_v16  ;;  %978 = vmatprep.subr.bf16.mxu1 %v1143_v11  ;;  %v1291_v31 = vld [vmem:[%s1519_s13 + $0x8] sm:$0xff]  ;;  %v1302_v33 = vld [vmem:[%s1519_s13 + $0x30] sm:$0xff]  ;;  %v1308_v34 = vld [vmem:[%s1519_s13 + $0x18] sm:$0xff]  ;;  %vm869_vm7 = vcmask 33792  }
   0xf   :  { %1069 = vmatprep.subr.bf16.mxu0 %v1068_v15  ;;  %260 = vrot.lane.b32.xlu0 %v1285_v30, %s1145_s18  ;;  %v1315_v35 = vld [vmem:[%s1519_s13 + $0x20] sm:$0xff]  ;;  %v1321_v36 = vld [vmem:[%s1519_s13 + $0x28] sm:$0xff]  ;;  %v1327_v37 = vld [vmem:[%s1519_s13 + $0x38] sm:$0xff]  ;;  %s1147_s13 = smov 64  }
  0x10   :  { %v889_v47 = vld [vmem:[%s1513_s7] ss:$0 sm:$0xff]  ;;  %s1146_s7 = smov 96  }
  0x11   :  { %979 = vmatpush3.bf16.msra.mxu1 %v1081_v29 }
  0x12   :  { %1071 = vmatpush3.bf16.msra.mxu0 %v1068_v15  ;;  %984 = vmatprep.subr.bf16.mxu1 %v1143_v11 }
  0x13   :  { %996 = vmatprep.subr.bf16.mxu0 %v1143_v11  ;;  %264 = vrot.lane.b32.xlu0 %v1296_v32, %s1145_s18 }
  0x17   :  { %266 = vrot.lane.b32.xlu0 %v1308_v34, %s1145_s18 }
  0x1b   :  { %268 = vrot.lane.b32.xlu0 %v1315_v35, %s1145_s18 }
  0x1f   :  { %270 = vrot.lane.b32.xlu0 %v1321_v36, %s1145_s18 }
  0x23   :  { %274 = vrot.lane.b32.xlu0 %v1327_v37, %s1145_s18 }
  0x81   :  { %v56_v18 = vpop.permute.xlu0 %55 }
  0x82   :  { %vm60_vm1 = vcmp.eq.s32.totalorder %v51_v17, %v56_v18 }
  0x83   :  { %v885_v19 = vsel %vm60_vm1, 1.0, %v1143_v11 }
  0x84   :  { %973 = vmatprep.mubr.msk.f32.mxu0 %vm74_vm0, %v885_v19 }
  0x85   :  { %v59_v20 = vpop.permute.xlu0 %58 }
  0x86   :  { %vm61_vm2 = vcmp.eq.s32.totalorder %v51_v17, %v59_v20 }
  0x87   :  { %v886_v21 = vsel %vm61_vm2, 1.0, %v1143_v11 }
  0x88   :  { %974 = vmatmul.mubr.msk.f32.vlgmr.msra.gmra.mrb[0].mxu0 %vm74_vm0, %v886_v21 }
  0x89   :  { %1004 = vmatprep.mubr.msk.bf16.mxu0 %vm1144_vm4, %v1143_v11  ;;  %v261_v52 = vpop.permute.xlu0 %260 }
  0x8d   :  { %v265_v53 = vpop.permute.xlu0 %264 }
  0x91   :  { %v267_v54 = vpop.permute.xlu0 %266 }
  0x95   :  { %v269_v55 = vpop.permute.xlu0 %268 }
  0x99   :  { %v271_v57 = vpop.permute.xlu0 %270 }
  0x9d   :  { %v275_v60 = vpop.permute.xlu0 %274 }
 0x15b   :  { %v1260_v22 = vpop.f32.mrb[0].mxu0 }
 0x15c   :  { %v1262_v23 = vpop.f32.mrb[1].mxu0  ;;  %v158_v26 = vmul.f32 %v1260_v22, %v1260_v22 }
 0x15d   :  { %v157_v24 = vmul.f32 %v1262_v23, %v1262_v23 }
 0x15e   :  { %v163_v27 = vsel %vm159_vm3, %v158_v26, 0.0 }
 0x15f   :  { %v160_v25 = vsel %vm159_vm3, %v157_v24, 0.0 }
 0x160   :  { %161 = vadd.xlane.f32.xlu1 %v160_v25 }
 0x164   :  { %164 = vadd.xlane.f32.xlu1 %v163_v27 }
 0x175   :  { %262 = vrot.lane.b32.xlu1 %v1291_v31, %s1145_s18 }
 0x179   :  { %272 = vrot.lane.b32.xlu1 %v1302_v33, %s1145_s18 }
 0x1ed   :  { %v162_v38 = vpop.xlane.xlu1 %161 }
 0x1ee   :  { %v167_v39 = vmul.f32 0.03125, %v162_v38 }
 0x1f0   :  { %v169_v40 = vadd.f32 1e-05, %v167_v39 }
 0x1f1   :  { %v165_v41 = vpop.xlane.xlu1 %164 }
 0x1f2   :  { %1092 = vrsqrt.f32 %v169_v40  ;;  %v168_v42 = vmul.f32 0.03125, %v165_v41 }
 0x1f4   :  { %v170_v43 = vadd.f32 1e-05, %v168_v42 }
 0x1f5   :  { %v263_v56 = vpop.permute.xlu1 %262 }
 0x1f6   :  { %1094 = vrsqrt.f32 %v170_v43 }
 0x1f9   :  { %v273_v58 = vpop.permute.xlu1 %272 }
 0x1fc   :  { %v1093_v44 = vpop.eup %1092 }
 0x1fd   :  { %v173_v45 = vmul.f32 %v1093_v44, %v1262_v23 }
 0x1ff   :  { %v181_v49 = vmul.f32 %v889_v47, %v173_v45 }
 0x200   :  { %v1095_v46 = vpop.eup %1094 }
 0x201   :  { %v174_v48 = vmul.f32 %v1095_v46, %v1260_v22 }
 0x203   :  { %v182_v50 = vmul.f32 %v889_v47, %v174_v48 }
 0x205   :  { %v183_v51 = vpack.c.bf16 %v182_v50, %v181_v49 }
 0x207   :  { %981 = vmatmul.mubr.msk.bf16.vlgmr.msra.gmra.mrb[0].mxu1 %vm159_vm3, %v183_v51 }
 0x208   :  { %992 = vmatprep.mubr.msk.bf16.mxu1 %vm1144_vm4, %v1143_v11 }
 0x2da   :  { %v1338_v59 = vpop.f32.mrb[0].mxu1 }
 0x2db   :  { %v982_v61 = vpop.f32.mrb[1].mxu1  ;;  %v290_v62 = vmul.f32 %v273_v58, %v1338_v59  ;;  %v286_v0 = vmul.f32 %v265_v53, %v1338_v59  ;;  %v284_v1 = vmul.f32 %v261_v52, %v1338_v59  ;;  %v288_v2 = vmul.f32 %v269_v55, %v1338_v59 }
 0x2dc   :  { %v1341_v63 = vpop.f32.mrb[2].mxu1 }
 0x2dd   :  { %v983_v3 = vpop.f32.mrb[3].mxu1  ;;  %v287_v4 = vmul.f32 %v267_v54, %v1341_v63  ;;  %v285_v5 = vmul.f32 %v263_v56, %v1341_v63  ;;  %v289_v6 = vmul.f32 %v271_v57, %v1341_v63  ;;  %v291_v7 = vmul.f32 %v275_v60, %v1341_v63  ;;  %v333_v54 = vld [vmem:[%s1518_s12] sm:$0xff]  ;;  %v334_v56 = vld [vmem:[%s1518_s12 + $0x8] sm:$0xff] }
 0x2de   :  { %v332_v8 = vpack.c.bf16 %v1341_v63, %v1338_v59 }
 0x2df   :  { %v293_v9 = vpack.c.bf16 %v287_v4, %v286_v0  ;;  %v292_v10 = vpack.c.bf16 %v285_v5, %v284_v1  ;;  %v294_v12 = vpack.c.bf16 %v289_v6, %v288_v2  ;;  %v295_v13 = vpack.c.bf16 %v291_v7, %v290_v62 }
 0x2e1   :  { %341 = vrot.lane.b32.xlu0 %v293_v9, %s1146_s7  ;;  %339 = vrot.lane.b32.xlu1 %v292_v10, %s1146_s7  ;;  %v476_v10 = vpack.c.bf16 %v1291_v31, %v1285_v30 }
 0x2e5   :  { %343 = vrot.lane.b32.xlu1 %v294_v12, %s1146_s7  ;;  %345 = vrot.lane.b32.xlu0 %v295_v13, %s1146_s7  ;;  %v477_v13 = vpack.c.bf16 %v1308_v34, %v1296_v32 }
 0x2e9   :  { %296 = vrot.lane.b32.xlu1 %v1285_v30, %s1147_s13  ;;  %298 = vrot.lane.b32.xlu0 %v1291_v31, %s1147_s13  ;;  %v479_v30 = vpack.c.bf16 %v1327_v37, %v1302_v33  ;;  %v1082_v31 = vld [vmem:[%s1510_s4] sm:$0xff]  }
 0x2ed   :  { %300 = vrot.lane.b32.xlu1 %v1296_v32, %s1147_s13  ;;  %302 = vrot.lane.b32.xlu0 %v1308_v34, %s1147_s13  ;;  %v1083_v32 = vld [vmem:[%s1510_s4 + $0x8] sm:$0xff]  }
 0x2f1   :  { %304 = vrot.lane.b32.xlu1 %v1315_v35, %s1147_s13  ;;  %306 = vrot.lane.b32.xlu0 %v1321_v36, %s1147_s13 }
 0x2f5   :  { %308 = vrot.lane.b32.xlu1 %v1302_v33, %s1147_s13  ;;  %310 = vrot.lane.b32.xlu0 %v1327_v37, %s1147_s13 }
 0x353   :  { %v342_v14 = vpop.permute.xlu0 %341  ;;  %v340_v15 = vpop.permute.xlu1 %339 }
 0x354   :  { %v351_v16 = vsel %vm159_vm3, %v340_v15, 0  ;;  %v354_v21 = vsel %vm159_vm3, %v342_v14, 0  ;;  %v478_v14 = vpack.c.bf16 %v1321_v36, %v1315_v35 }
 0x355   :  { %985 = vmatpush3.bf16.xpose.msra.mxu1 %v351_v16 }
 0x356   :  { %986 = vmatprep.subr.bf16.mxu1 %v1143_v11 }
 0x357   :  { %v346_v17 = vpop.permute.xlu0 %345  ;;  %v344_v18 = vpop.permute.xlu1 %343 }
 0x358   :  { %v357_v42 = vsel %vm159_vm3, %v344_v18, 0  ;;  %v360_v51 = vsel %vm159_vm3, %v346_v17, 0 }
 0x35b   :  { %v299_v19 = vpop.permute.xlu0 %298  ;;  %v297_v20 = vpop.permute.xlu1 %296 }
 0x35c   :  { %v321_v24 = vmul.f32 %v299_v19, %v1341_v63  ;;  %v320_v25 = vmul.f32 %v297_v20, %v1338_v59 }
 0x35d   :  { %987 = vmatpush3.bf16.xpose.msra.mxu1 %v354_v21 }
 0x35e   :  { %v328_v26 = vpack.c.bf16 %v321_v24, %v320_v25  ;;  %988 = vmatprep.subr.bf16.mxu1 %v1143_v11 }
 0x35f   :  { %v303_v27 = vpop.permute.xlu0 %302  ;;  %v301_v28 = vpop.permute.xlu1 %300 }
 0x360   :  { %v323_v29 = vmul.f32 %v303_v27, %v1341_v63  ;;  %v322_v38 = vmul.f32 %v301_v28, %v1338_v59  ;;  %420 = vrot.lane.b32.xlu0 %v328_v26, %s1147_s13 }
 0x362   :  { %v329_v39 = vpack.c.bf16 %v323_v29, %v322_v38 }
 0x363   :  { %v307_v40 = vpop.permute.xlu0 %306  ;;  %v305_v41 = vpop.permute.xlu1 %304 }
 0x364   :  { %v325_v43 = vmul.f32 %v307_v40, %v1341_v63  ;;  %v324_v44 = vmul.f32 %v305_v41, %v1338_v59  ;;  %422 = vrot.lane.b32.xlu1 %v329_v39, %s1147_s13 }
 0x365   :  { %989 = vmatpush3.bf16.xpose.msra.mxu1 %v357_v42 }
 0x366   :  { %v330_v45 = vpack.c.bf16 %v325_v43, %v324_v44  ;;  %990 = vmatprep.subr.bf16.mxu1 %v1143_v11 }
 0x367   :  { %v311_v46 = vpop.permute.xlu0 %310  ;;  %v309_v47 = vpop.permute.xlu1 %308 }
 0x368   :  { %v327_v48 = vmul.f32 %v311_v46, %v1341_v63  ;;  %v326_v49 = vmul.f32 %v309_v47, %v1338_v59 }
 0x36a   :  { %v331_v50 = vpack.c.bf16 %v327_v48, %v326_v49 }
 0x36d   :  { %991 = vmatpush3.bf16.xpose.msra.mxu1 %v360_v51 }
 0x36e   :  { %1020 = vmatprep.subr.bf16.mxu1 %v1143_v11 }
 0x374   :  { %993 = vmatmul.mubr.msk.bf16.vlgmr.msra.gmra.mrb[4].mxu1 %vm159_vm3, %v332_v8 }
 0x375   :  { %1024 = vmatprep.mubr.msk.bf16.mxu1 %vm1144_vm4, %v1143_v11  ;;  %1021 = vmatpush3.bf16.msra.mxu1 %v1082_v31 }
 0x376   :  { %1022 = vmatprep.subr.bf16.mxu1 %v1143_v11 }
 0x379   :  { %1023 = vmatpush3.bf16.msra.mxu1 %v1083_v32 }
 0x37a   :  { %1036 = vmatprep.subr.bf16.mxu1 %v1143_v11 }
 0x3d2   :  { %v421_v52 = vpop.permute.xlu0 %420 }
 0x3d3   :  { %997 = vmatpush3.bf16.msra.mxu0 %v421_v52  ;;  %v899_v52 = vld [vmem:[%s1514_s8] ss:$0 sm:$0xff] }
 0x3d4   :  { %998 = vmatprep.subr.bf16.mxu0 %v1143_v11 }
 0x3d6   :  { %v423_v53 = vpop.permute.xlu1 %422 }
 0x3d7   :  { %999 = vmatpush3.bf16.msra.mxu0 %v423_v53 }
 0x3d8   :  { %1000 = vmatprep.subr.bf16.mxu0 %v1143_v11 }
 0x447   :  { %v396_v55 = vpop.f32.mrb[4].mxu1 }
 0x448   :  { %v397_v57 = vadd.f32 %v396_v55, %v333_v54  ;;  %v994_v58 = vpop.f32.mrb[5].mxu1 }
 0x449   :  { %v399_v59 = vpop.f32.mrb[6].mxu1  ;;  %v1087_v58 = vld [vmem:[%s1512_s6 + $0x8] sm:$0xff]  }
 0x44a   :  { %v400_v60 = vadd.f32 %v399_v59, %v334_v56  ;;  %v995_v61 = vpop.f32.mrb[7].mxu1  ;;  %v403_v62 = vsel %vm74_vm0, %v397_v57, -inf  ;;  %v1088_v59 = vld [vmem:[%s1512_s6 + $0x10] sm:$0xff]  }
 0x44b   :  { %404 = vmax.xlane.f32.xlu1 %v403_v62 }
 0x44c   :  { %v406_v63 = vsel %vm74_vm0, %v400_v60, -inf }
 0x44d   :  { %407 = vmax.xlane.f32.xlu0 %v406_v63 }
 0x45c   :  { %424 = vrot.lane.b32.xlu1 %v330_v45, %s1147_s13 }
 0x463   :  { %426 = vrot.lane.b32.xlu0 %v331_v50, %s1147_s13 }
 0x4d8   :  { %v405_v0 = vpop.xlane.xlu1 %404 }
 0x4d9   :  { %v409_v1 = vsub.f32 %v397_v57, %v405_v0  ;;  %v1086_v57 = vld [vmem:[%s1512_s6] sm:$0xff]  }
 0x4da   :  { %v408_v2 = vpop.xlane.xlu0 %407 }
 0x4db   :  { %v411_v3 = vmul.f32 1.442695, %v409_v1  ;;  %v410_v4 = vsub.f32 %v400_v60, %v408_v2  ;;  %v1089_v60 = vld [vmem:[%s1512_s6 + $0x18] sm:$0xff]  }
 0x4dc   :  { %v425_v5 = vpop.permute.xlu1 %424 }
 0x4dd   :  { %v413_v6 = vmul.f32 1.442695, %v410_v4  ;;  %1001 = vmatpush3.bf16.msra.mxu0 %v425_v5  ;;  %1096 = vpow2.f32 %v411_v3 }
 0x4de   :  { %1002 = vmatprep.subr.bf16.mxu0 %v1143_v11  ;;  %v427_v7 = vpop.permute.xlu0 %426 }
 0x4df   :  { %1098 = vpow2.f32 %v413_v6 }
 0x4e1   :  { %1003 = vmatpush3.bf16.msra.mxu0 %v427_v7 }
 0x4e2   :  { %1008 = vmatprep.subr.bf16.mxu0 %v1143_v11 }
 0x4e7   :  { %v1097_v8 = vpop.eup %1096 }
 0x4e9   :  { %v1099_v9 = vpop.eup %1098 }
 0x4ea   :  { %v415_v12 = vpack.c.bf16 %v1099_v9, %v1097_v8 }
 0x4ec   :  { %1005 = vmatmul.mubr.msk.bf16.vlgmr.msra.gmra.mrb[4].mxu0 %vm74_vm0, %v415_v12 }
 0x4ed   :  { %1009 = vmatpush3.bf16.msra.mxu0 %v476_v10  ;;  %1016 = vmatprep.mubr.msk.bf16.mxu0 %vm1144_vm4, %v1143_v11 }
 0x4ee   :  { %1010 = vmatprep.subr.bf16.mxu0 %v1143_v11 }
 0x4f1   :  { %1011 = vmatpush3.bf16.msra.mxu0 %v477_v13 }
 0x4f2   :  { %1012 = vmatprep.subr.bf16.mxu0 %v1143_v11 }
 0x4f5   :  { %1013 = vmatpush3.bf16.msra.mxu0 %v478_v14 }
 0x4f6   :  { %1014 = vmatprep.subr.bf16.mxu0 %v1143_v11 }
 0x4f9   :  { %1015 = vmatpush3.bf16.msra.mxu0 %v479_v30 }
 0x4fa   :  { %1028 = vmatprep.subr.bf16.mxu0 %v1143_v11 }
 0x4fc   :  { %1017 = vmatmul.mubr.msk.bf16.vlgmr.msra.gmra.mrb[8].mxu0 %vm74_vm0, %v415_v12 }
 0x4fd   :  { %1032 = vmatprep.mubr.msk.bf16.mxu0 %vm1144_vm4, %v1143_v11 }
 0x5bf   :  { %v469_v33 = vpop.f32.mrb[4].mxu0 }
 0x5c0   :  { %v1006_v34 = vpop.f32.mrb[5].mxu0 }
 0x5c1   :  { %v472_v35 = vpop.f32.mrb[6].mxu0 }
 0x5c2   :  { %v1007_v36 = vpop.f32.mrb[7].mxu0 }
 0x5cf   :  { %v514_v37 = vpop.f32.mrb[8].mxu0 }
 0x5d0   :  { %1100 = vrcp.f32 %v514_v37  ;;  %v1018_v15 = vpop.f32.mrb[9].mxu0 }
 0x5d1   :  { %v517_v16 = vpop.f32.mrb[10].mxu0 }
 0x5d2   :  { %1102 = vrcp.f32 %v517_v16  ;;  %v1019_v17 = vpop.f32.mrb[11].mxu0 }
 0x5da   :  { %v1101_v18 = vpop.eup %1100 }
 0x5db   :  { %v523_v19 = vmul.f32 %v1101_v18, %v469_v33 }
 0x5dc   :  { %v1103_v20 = vpop.eup %1102 }
 0x5dd   :  { %v524_v21 = vmul.f32 %v1103_v20, %v472_v35  ;;  %v1090_v20 = vld [vmem:[%s1516_s10] sm:$0xff]  }
 0x5df   :  { %v525_v24 = vpack.c.bf16 %v524_v21, %v523_v19  ;;  %v1091_v21 = vld [vmem:[%s1516_s10 + $0x8] sm:$0xff]   ;;  %s1148_s10 = smov [#allocation3]  }
 0x5e0   :  { %s877_s18 = sshll.u32 %s1148_s10, 4  ;;  %s878_s18 = int_to_ptr.vmem [resolvable:$true] %s877_s18 }
 0x5e1   :  { %1025 = vmatmul.mubr.msk.bf16.vlgmr.msra.gmra.mrb[8].mxu1 %vm159_vm3, %v525_v24  ;;  %p1123_p1 = scmp.lt.s32.totalorder %s878_s18, %s878_s18 }
 0x5e2   :  { %1044 = vmatprep.mubr.msk.bf16.mxu1 %vm1144_vm4, %v1143_v11  ;;  %1037 = vmatpush3.bf16.msra.mxu1 %v1086_v57 }
 0x5e3   :  { %1038 = vmatprep.subr.bf16.mxu1 %v1143_v11 }
 0x5e6   :  { %1039 = vmatpush3.bf16.msra.mxu1 %v1087_v58 }
 0x5e7   :  { %1040 = vmatprep.subr.bf16.mxu1 %v1143_v11 }
 0x5ea   :  { %1041 = vmatpush3.bf16.msra.mxu1 %v1088_v59 }
 0x5eb   :  { %1042 = vmatprep.subr.bf16.mxu1 %v1143_v11 }
 0x5ee   :  { %1043 = vmatpush3.bf16.msra.mxu1 %v1089_v60 }
 0x6b4   :  { %v579_v25 = vpop.f32.mrb[8].mxu1 }
 0x6b5   :  { %v1433_v26 = vadd.f32 %v579_v25, %v1262_v23  ;;  %v1026_v27 = vpop.f32.mrb[9].mxu1  ;;  %v1084_v23 = vld [vmem:[%s1511_s5] sm:$0xff]  }
 0x6b6   :  { %v582_v28 = vpop.f32.mrb[10].mxu1  ;;  %1029 = vmatpush3.bf16.msra.mxu0 %v1084_v23 }
 0x6b7   :  { %v1436_v29 = vadd.f32 %v1260_v22, %v582_v28  ;;  %v1027_v38 = vpop.f32.mrb[11].mxu1  ;;  %v589_v39 = vmul.f32 %v1433_v26, %v1433_v26  ;;  %1030 = vmatprep.subr.bf16.mxu0 %v1143_v11  ;;  %v1085_v22 = vld [vmem:[%s1511_s5 + $0x8] sm:$0xff]   ;;  %v910_v28 = vld [vmem:[%s1515_s9] ss:$0 sm:$0xff]  ;;  %s1118_s9 = scalar_lea.vmem %s878_s18, 32 }
 0x6b8   :  { %p1119_p0 = scmp.ne.s32.totalorder %s878_s18, %s1118_s9  ;;  %p1124_p2 = scmp.lt.s32.totalorder %s1118_s9, %s1118_s9 }
 0x6b9   :  { %v591_v40 = vsel %vm159_vm3, %v589_v39, 0.0  ;;  %v590_v41 = vmul.f32 %v1436_v29, %v1436_v29 }
 0x6ba   :  { %592 = vadd.xlane.f32.xlu1 %v591_v40  ;;  %1031 = vmatpush3.bf16.msra.mxu0 %v1085_v22  ;;  %p1125_p3 = por %p1124_p2, %p1123_p1 }
 0x6bb   :  { %v594_v42 = vsel %vm159_vm3, %v590_v41, 0.0  ;;  %1048 = vmatprep.subr.bf16.mxu0 %v1143_v11 }
 0x6bc   :  { %595 = vadd.xlane.f32.xlu0 %v594_v42  ;;  %p1126_p4 = pnand %p1125_p3, %p1119_p0 }
 0x747   :  { %v593_v43 = vpop.xlane.xlu1 %592 }
 0x748   :  { %v597_v44 = vmul.f32 0.03125, %v593_v43 }
 0x749   :  { %v596_v45 = vpop.xlane.xlu0 %595 }
 0x74a   :  { %v599_v46 = vadd.f32 1e-05, %v597_v44  ;;  %v598_v47 = vmul.f32 0.03125, %v596_v45 }
 0x74c   :  { %1104 = vrsqrt.f32 %v599_v46  ;;  %v600_v48 = vadd.f32 1e-05, %v598_v47 }
 0x74e   :  { %1106 = vrsqrt.f32 %v600_v48 }
 0x756   :  { %v1105_v49 = vpop.eup %1104 }
 0x757   :  { %v603_v50 = vmul.f32 %v1105_v49, %v1433_v26 }
 0x758   :  { %v1107_v51 = vpop.eup %1106 }
 0x759   :  { %v604_v53 = vmul.f32 %v1107_v51, %v1436_v29  ;;  %v611_v54 = vmul.f32 %v899_v52, %v603_v50 }
 0x75b   :  { %v612_v55 = vmul.f32 %v899_v52, %v604_v53 }
 0x75d   :  { %v613_v56 = vpack.c.bf16 %v612_v55, %v611_v54 }
 0x75f   :  { %1033 = vmatmul.mubr.msk.bf16.vlgmr.msra.gmra.mrb[12].mxu0 %vm159_vm3, %v613_v56 }
 0x760   :  { %1052 = vmatprep.mubr.msk.bf16.mxu0 %vm1144_vm4, %v1143_v11  ;;  %1049 = vmatpush3.bf16.msra.mxu0 %v1090_v20 }
 0x761   :  { %1050 = vmatprep.subr.bf16.mxu0 %v1143_v11  ;;  %v911_v11 = vld [vmem:[%s1517_s11] ss:$0 sm:$0xff] }
 0x764   :  { %1051 = vmatpush3.bf16.msra.mxu0 %v1091_v21 }
 0x832   :  { %v667_v61 = vpop.f32.mrb[12].mxu0 }
 0x833   :  { %690 = vrot.lane.b32.xlu0 %v667_v61, %s1147_s13  ;;  %v1034_v62 = vpop.f32.mrb[13].mxu0  ;;  %v903_v1 = vmul.f32 -1.442695, %v667_v61 }
 0x834   :  { %v670_v63 = vpop.f32.mrb[14].mxu0 }
 0x835   :  { %692 = vrot.lane.b32.xlu1 %v670_v63, %s1147_s13  ;;  %v1035_v0 = vpop.f32.mrb[15].mxu0  ;;  %v904_v2 = vmul.f32 -1.442695, %v670_v63  ;;  %1108 = vpow2.f32 %v903_v1 }
 0x837   :  { %1110 = vpow2.f32 %v904_v2 }
 0x83f   :  { %v1109_v3 = vpop.eup %1108 }
 0x840   :  { %v680_v5 = vadd.f32 1.0, %v1109_v3 }
 0x841   :  { %v1111_v4 = vpop.eup %1110 }
 0x842   :  { %v681_v6 = vadd.f32 1.0, %v1111_v4  ;;  %1112 = vrcp.f32 %v680_v5 }
 0x844   :  { %1114 = vrcp.f32 %v681_v6 }
 0x84c   :  { %v1113_v7 = vpop.eup %1112 }
 0x84d   :  { %v686_v10 = vmul.f32 %v1113_v7, %v667_v61 }
 0x84e   :  { %v1115_v8 = vpop.eup %1114 }
 0x84f   :  { %v687_v12 = vmul.f32 %v1115_v8, %v670_v63 }
 0x8a5   :  { %v691_v9 = vpop.permute.xlu0 %690 }
 0x8a6   :  { %v696_v14 = vmul.f32 %v691_v9, %v686_v10 }
 0x8a7   :  { %v693_v13 = vpop.permute.xlu1 %692 }
 0x8a8   :  { %v697_v30 = vmul.f32 %v693_v13, %v687_v12 }
 0x8aa   :  { %v698_v31 = vpack.c.bf16 %v697_v30, %v696_v14 }
 0x8ac   :  { %1045 = vmatmul.mubr.msk.bf16.vlgmr.msra.gmra.mrb[12].mxu1 %vm74_vm0, %v698_v31 }
 0x97f   :  { %v768_v32 = vpop.f32.mrb[12].mxu1 }
 0x980   :  { %v775_v33 = vadd.f32 %v768_v32, %v1433_v26  ;;  %v1046_v34 = vpop.f32.mrb[13].mxu1 }
 0x981   :  { %v771_v35 = vpop.f32.mrb[14].mxu1 }
 0x982   :  { %v776_v36 = vadd.f32 %v771_v35, %v1436_v29  ;;  %v1047_v37 = vpop.f32.mrb[15].mxu1  ;;  %v778_v15 = vrot.slane %v775_v33, 7 }
 0x984   :  { %v781_v16 = vrot.slane %v776_v36, 6 }
 0x986   :  { %v784_v17 = vsel %vm783_vm5, %v778_v15, %v781_v16 }
 0x987   :  { %v786_v18 = vmul.f32 %v784_v17, %v784_v17 }
 0x989   :  { %v788_v19 = vsel %vm787_vm6, %v786_v18, 0.0 }
 0x98a   :  { %789 = vadd.xlane.f32.xlu1 %v788_v19 }
 0xa17   :  { %v790_v24 = vpop.xlane.xlu1 %789 }
 0xa18   :  { %v791_v25 = vmul.f32 0.03125, %v790_v24 }
 0xa1a   :  { %v792_v26 = vadd.f32 1e-05, %v791_v25 }
 0xa1c   :  { %1116 = vrsqrt.f32 %v792_v26 }
 0xa26   :  { %v1117_v27 = vpop.eup %1116 }
 0xa27   :  { %v794_v29 = vmul.f32 %v1117_v27, %v784_v17 }
 0xa29   :  { %v801_v38 = vmul.f32 %v910_v28, %v794_v29 }
 0xa2b   :  { %v802_v39 = vpack.c.bf16 %v801_v38, %v801_v38 }
 0xa2d   :  { %1053 = vmatmul.mubr.msk.bf16.vlgmr.msra.gmra.mrb[16].mxu0 %vm159_vm3, %v802_v39 }
 0xb00   :  { %v863_v40 = vpop.f32.mrb[16].mxu0 }
 0xb01   :  { %v864_v41 = vadd.f32 %v911_v11, %v863_v40  ;;  %v1054_v42 = vpop.f32.mrb[17].mxu0 }
 0xb02   :  { %v866_v23 = vpop.f32.mrb[18].mxu0 }
 0xb03   :  { %v1055_v22 = vpop.f32.mrb[19].mxu0  ;;  %870 = vst.msk [vmem:[#allocation3] sm:$0x3] %vm869_vm7, %v864_v41 }
 0xb04   :  { %1129 = shalt.err (!%p1126_p4)
}
 0xb05   :  { %s1130_s11 = scalar_lea.hbm %s1520_s14, 32 }
 0xb06   :  { %p1131_p5 = scmp.ne.s32.totalorder %s1520_s14, %s1130_s11  ;;  %p1134_p6 = scmp.lt.u32.totalorder %s1130_s11, %s1520_s14 }
 0xb08   :  { %p1136_p7 = pnand %p1134_p6, %p1131_p5 }
 0xb0a   :  { %1139 = shalt.err (!%p1136_p7)
}
 0xb0b   :  { %880 = dma.vmem_to_hbm [thread:$0]  %s878_s18, 32, %s1520_s14, [#allocation4]  }
 0xb0c   :  { %1140 = dma.done.wait [#allocation4], 32  }
 0xb0d   :  { %1141 = vsyncadd [#allocation4], 4294967264 }
 0xb0e   :  { %884 = vsyncpa [#allocation4], 1 }

</bundles_post_ra>
